<compile_context>
chip_gen: v6e
topology: v6e:2x2x1
jax: 0.10.0
libtpu: 0.0.40
codegen_flags: <defaults>
</compile_context>

<pallas_src>
import jax
import jax.numpy as jnp
from jax.experimental import pallas as pl
from jax.experimental.pallas import tpu as pltpu


def _soft_pos_embed_kernel(pos_ref, wb_ref, x_ref, o_ref, emb_ref):
    # pos_ref: (nsd, T)        positions in [0, 1], channels-first spatial tile
    # wb_ref : (C, nsd + 1)    [w_eff | b_eff]  (folded nn.Linear params)
    # x_ref  : (1, C, T)       one batch element, channels-first spatial tile
    # o_ref  : (1, C, T)
    # emb_ref: (C, T) f32 VMEM scratch -- batch-invariant embedding tile
    nsd = pos_ref.shape[0]

    # Embedding depends only on the spatial tile; recompute it only when the
    # innermost (batch) grid index wraps to 0, i.e. once per spatial tile.
    @pl.when(pl.program_id(1) == 0)
    def _():
        acc = wb_ref[:, nsd:nsd + 1].astype(jnp.float32)            # b_eff (C, 1)
        # nsd VPU broadcast FMAs: (C,1) * (1,T) -> (C,T). No MXU, no concat.
        for k in range(nsd):
            p = pos_ref[k:k + 1, :].astype(jnp.float32)              # (1, T)
            acc = acc + wb_ref[:, k:k + 1].astype(jnp.float32) * p   # (C, T)
        emb_ref[...] = jnp.broadcast_to(acc, emb_ref.shape)

    # Per-batch hot path: a single elementwise add.
    # TODO(synk): if the surrounding model runs bf16 end-to-end (v6e/v7x),
    # the f32 round-trip here could be dropped to halve vreg traffic.
    o_ref[0] = (x_ref[0].astype(jnp.float32) + emb_ref[...]).astype(o_ref.dtype)


def _pick_hw_tile(hw_pad, c, itemsize, max_bytes=1 << 20):
    """Largest spatial tile that is a multiple of 128, divides hw_pad, and keeps
    a single (C, tile) buffer under ~max_bytes (~1 MiB is already at the HBM
    roofline for mem-bound elementwise work)."""
    assert hw_pad % 128 == 0
    budget = max(128, (max_bytes // max(c * itemsize, 1)) // 128 * 128)
    tile = min(hw_pad, budget)
    while hw_pad % tile != 0:
        tile -= 128
    return tile


def soft_position_embed(inputs_nchw, positions_hw2, weight, bias, *, donate_input=False):
    """Equivalent of SoftPositionEmbed(n_spatial_dims=2, feature_dim=C,
    cnn_channel_order=True, savi_style=False).forward(inputs, positions).

    inputs_nchw  : (B, C, H, W)  float32
    positions_hw2: (H, W, nsd)   float32, values in [0, 1]
    weight       : (C, 2*nsd)    nn.Linear weight (out_features, in_features)
    bias         : (C,)          nn.Linear bias
    donate_input : alias the (padded) input buffer to the output. Only a win
                   when the caller actually donates `inputs_nchw`.
    """
    B, C, H, W = inputs_nchw.shape
    HW = H * W
    nsd = positions_hw2.shape[-1]
    assert weight.shape == (C, 2 * nsd)

    # --- glue: fold (1 - p) into the parameters (tiny tensors, one-time) ---
    #   emb = W1 @ p + W2 @ (1 - p) + b = (W1 - W2) @ p + (b + W2 @ 1)
    w_eff = weight[:, :nsd] - weight[:, nsd:]                       # (C, nsd)
    b_eff = bias + jnp.sum(weight[:, nsd:], axis=-1)                # (C,)
    wb = jnp.concatenate([w_eff, b_eff[:, None]], axis=-1)          # (C, nsd+1)

    # --- glue: free views; positions are tiny ---
    x = inputs_nchw.reshape(B, C, HW)                               # view of NCHW
    pos_cf = positions_hw2.reshape(HW, nsd).T                       # (nsd, HW)

    # Pad the spatial (lane) axis to a multiple of 128 so every block is
    # lane-dense and bounded; padded columns are sliced off afterwards.
    HW_pad = ((HW + 127) // 128) * 128
    if HW_pad != HW:
        x = jnp.pad(x, ((0, 0), (0, 0), (0, HW_pad - HW)))
        pos_cf = jnp.pad(pos_cf, ((0, 0), (0, HW_pad - HW)))

    itemsize = jnp.dtype(inputs_nchw.dtype).itemsize
    hw_tile = _pick_hw_tile(HW_pad, C, itemsize)
    n_tiles = HW_pad // hw_tile
    # Spatial axis first ("parallel", shards across cores); batch innermost
    # ("arbitrary") so the embedding scratch is reused across the batch.
    grid = (n_tiles, B)

    out = pl.pallas_call(
        _soft_pos_embed_kernel,
        out_shape=jax.ShapeDtypeStruct((B, C, HW_pad), inputs_nchw.dtype),
        grid_spec=pltpu.PrefetchScalarGridSpec(
            num_scalar_prefetch=0,
            grid=grid,
            in_specs=[
                pl.BlockSpec((nsd, hw_tile), lambda t, b: (0, t)),      # positions (shared over B)
                pl.BlockSpec((C, nsd + 1), lambda t, b: (0, 0)),        # folded weight|bias (shared)
                pl.BlockSpec((1, C, hw_tile), lambda t, b: (b, 0, t)),  # inputs tile
            ],
            out_specs=pl.BlockSpec((1, C, hw_tile), lambda t, b: (b, 0, t)),
            scratch_shapes=[pltpu.VMEM((C, hw_tile), jnp.float32)],     # batch-invariant emb tile
        ),
        compiler_params=pltpu.CompilerParams(
            dimension_semantics=("parallel", "arbitrary"),
            vmem_limit_bytes=32 << 20,
        ),
        input_output_aliases=({2: 0} if donate_input else {}),
    )(pos_cf, wb, x)

    # --- glue: drop the pad, free view back to NCHW ---
    if HW_pad != HW:
        out = out[:, :, :HW]
    return out.reshape(B, C, H, W)


def _reference(inputs_nchw, positions_hw2, weight, bias):
    """Plain-JAX re-implementation of the PyTorch forward for verification."""
    pos_cat = jnp.concatenate([positions_hw2, 1.0 - positions_hw2], axis=-1)  # (H, W, 2*nsd)
    emb = pos_cat @ weight.T + bias                                           # (H, W, C)
    emb_chw = jnp.transpose(emb, (2, 0, 1))                                   # permute -> (C, H, W)
    return inputs_nchw + emb_chw[None]                                        # broadcast over B


def _make_positions(H, W):
    ys = jnp.linspace(0.0, 1.0, H)
    xs = jnp.linspace(0.0, 1.0, W)
    gy, gx = jnp.meshgrid(ys, xs, indexing="ij")
    return jnp.stack([gy, gx], axis=-1).astype(jnp.float32)          # (H, W, 2)


if __name__ == "__main__":
    n_spatial_dims = 2
    n_features = 2 * n_spatial_dims  # savi_style=False

    key = jax.random.PRNGKey(0)

    # Case 1: 128-aligned spatial extent (16*16 = 256).
    B, C, H, W = 2, 32, 16, 16
    k_x, k_w, k_b, key = jax.random.split(key, 4)
    inputs = jax.random.normal(k_x, (B, C, H, W), dtype=jnp.float32)
    positions = _make_positions(H, W)
    bound = 1.0 / (n_features ** 0.5)
    weight = jax.random.uniform(k_w, (C, n_features), jnp.float32, -bound, bound)
    bias = jax.random.uniform(k_b, (C,), jnp.float32, -bound, bound)

    out = jax.block_until_ready(soft_position_embed(inputs, positions, weight, bias))
    ref = _reference(inputs, positions, weight, bias)
    assert out.shape == (B, C, H, W)
    assert jnp.allclose(out, ref, atol=1e-5, rtol=1e-5)

    # Case 2: non-128-aligned spatial extent (10*10 = 100) exercises padding.
    B2, C2, H2, W2 = 2, 16, 10, 10
    k_x2, k_w2, k_b2, key = jax.random.split(key, 4)
    inputs2 = jax.random.normal(k_x2, (B2, C2, H2, W2), dtype=jnp.float32)
    positions2 = _make_positions(H2, W2)
    weight2 = jax.random.uniform(k_w2, (C2, n_features), jnp.float32, -bound, bound)
    bias2 = jax.random.uniform(k_b2, (C2,), jnp.float32, -bound, bound)

    out2 = jax.block_until_ready(soft_position_embed(inputs2, positions2, weight2, bias2))
    ref2 = _reference(inputs2, positions2, weight2, bias2)
    assert out2.shape == (B2, C2, H2, W2)
    assert jnp.allclose(out2, ref2, atol=1e-5, rtol=1e-5)

    print("KERNEL_OK")
</pallas_src>

<mosaic_0001>
module attributes {stable_mosaic.version = 11 : i64} {
  func.func @_soft_pos_embed_kernel(%arg0: i32, %arg1: i32, %arg2: memref<2x256xf32, #tpu.memory_space<vmem>>, %arg3: memref<32x3xf32, #tpu.memory_space<vmem>>, %arg4: memref<1x32x256xf32, #tpu.memory_space<vmem>>, %arg5: memref<1x32x256xf32, #tpu.memory_space<vmem>>, %arg6: memref<32x256xf32, #tpu.memory_space<vmem>>) attributes {dimension_semantics = [#tpu.dimension_semantics<parallel>, #tpu.dimension_semantics<arbitrary>], iteration_bounds = array<i64: 1, 2>, scalar_prefetch = 0 : i64, scratch_operands = 1 : i64, tpu.core_type = #tpu.core_type<tc>, window_params = [{transform_indices = @transform_0, window_bounds = array<i64: 2, 256>}, {pipeline_mode = #tpu.pipeline_mode<synchronous>, transform_indices = @transform_1, window_bounds = array<i64: 32, 3>}, {transform_indices = @transform_2, window_bounds = array<i64: 1, 32, 256>}, {transform_indices = @transform_3, window_bounds = array<i64: 1, 32, 256>}]} {
    %c0_i32 = arith.constant 0 : i32
    %0 = arith.cmpi eq, %arg1, %c0_i32 : i32
    %1 = arith.extui %0 : i1 to i32
    %c0_i32_0 = arith.constant 0 : i32
    %2 = arith.cmpi ne, %1, %c0_i32_0 : i32
    scf.if %2 {
      %c0_8 = arith.constant 0 : index
      %c2 = arith.constant 2 : index
      %10 = vector.load %arg3[%c0_8, %c2] : memref<32x3xf32, #tpu.memory_space<vmem>>, vector<32x1xf32>
      %c0_9 = arith.constant 0 : index
      %c0_10 = arith.constant 0 : index
      %11 = vector.load %arg2[%c0_9, %c0_10] : memref<2x256xf32, #tpu.memory_space<vmem>>, vector<1x256xf32>
      %c0_11 = arith.constant 0 : index
      %c0_12 = arith.constant 0 : index
      %12 = vector.load %arg3[%c0_11, %c0_12] : memref<32x3xf32, #tpu.memory_space<vmem>>, vector<32x1xf32>
      %13 = vector.broadcast %12 : vector<32x1xf32> to vector<32x256xf32>
      %14 = vector.broadcast %11 : vector<1x256xf32> to vector<32x256xf32>
      %15 = arith.mulf %13, %14 : vector<32x256xf32>
      %16 = vector.broadcast %10 : vector<32x1xf32> to vector<32x256xf32>
      %17 = arith.addf %16, %15 : vector<32x256xf32>
      %c1 = arith.constant 1 : index
      %c0_13 = arith.constant 0 : index
      %18 = vector.load %arg2[%c1, %c0_13] : memref<2x256xf32, #tpu.memory_space<vmem>>, vector<1x256xf32>
      %c0_14 = arith.constant 0 : index
      %c1_15 = arith.constant 1 : index
      %19 = vector.load %arg3[%c0_14, %c1_15] : memref<32x3xf32, #tpu.memory_space<vmem>>, vector<32x1xf32>
      %20 = vector.broadcast %19 : vector<32x1xf32> to vector<32x256xf32>
      %21 = vector.broadcast %18 : vector<1x256xf32> to vector<32x256xf32>
      %22 = arith.mulf %20, %21 : vector<32x256xf32>
      %23 = arith.addf %17, %22 : vector<32x256xf32>
      %c0_16 = arith.constant 0 : index
      %c0_17 = arith.constant 0 : index
      %24 = vector.load %arg6[%c0_16, %c0_17] : memref<32x256xf32, #tpu.memory_space<vmem>>, vector<32x256xf32>
      tpu.vector_store %arg6[%c0_16, %c0_17], %23 {strides = array<i32>} : memref<32x256xf32, #tpu.memory_space<vmem>>, vector<32x256xf32>,
    } else {
    }
    %c0 = arith.constant 0 : index
    %c0_1 = arith.constant 0 : index
    %c0_2 = arith.constant 0 : index
    %3 = vector.load %arg4[%c0, %c0_1, %c0_2] : memref<1x32x256xf32, #tpu.memory_space<vmem>>, vector<1x32x256xf32>
    %4 = vector.shape_cast %3 : vector<1x32x256xf32> to vector<32x256xf32>
    %c0_3 = arith.constant 0 : index
    %c0_4 = arith.constant 0 : index
    %5 = vector.load %arg6[%c0_3, %c0_4] : memref<32x256xf32, #tpu.memory_space<vmem>>, vector<32x256xf32>
    %6 = arith.addf %4, %5 : vector<32x256xf32>
    %c0_5 = arith.constant 0 : index
    %c0_6 = arith.constant 0 : index
    %c0_7 = arith.constant 0 : index
    %7 = vector.load %arg5[%c0_5, %c0_6, %c0_7] : memref<1x32x256xf32, #tpu.memory_space<vmem>>, vector<1x32x256xf32>
    %8 = vector.shape_cast %7 : vector<1x32x256xf32> to vector<32x256xf32>
    %9 = vector.shape_cast %6 : vector<32x256xf32> to vector<1x32x256xf32>
    tpu.vector_store %arg5[%c0_5, %c0_6, %c0_7], %9 {strides = array<i32>} : memref<1x32x256xf32, #tpu.memory_space<vmem>>, vector<1x32x256xf32>,
    return
  }
  func.func @transform_0(%arg0: i32, %arg1: i32) -> (i32, i32) {
    %c0_i32 = arith.constant 0 : i32
    %c0_i32_0 = arith.constant 0 : i32
    return %c0_i32, %arg0 : i32, i32
  }
  func.func @transform_1(%arg0: i32, %arg1: i32) -> (i32, i32) {
    %c0_i32 = arith.constant 0 : i32
    %c0_i32_0 = arith.constant 0 : i32
    %c0_i32_1 = arith.constant 0 : i32
    return %c0_i32, %c0_i32_0 : i32, i32
  }
  func.func @transform_2(%arg0: i32, %arg1: i32) -> (i32, i32, i32) {
    %c0_i32 = arith.constant 0 : i32
    %c0_i32_0 = arith.constant 0 : i32
    return %arg1, %c0_i32, %arg0 : i32, i32, i32
  }
  func.func @transform_3(%arg0: i32, %arg1: i32) -> (i32, i32, i32) {
    %c0_i32 = arith.constant 0 : i32
    %c0_i32_0 = arith.constant 0 : i32
    return %arg1, %c0_i32, %arg0 : i32, i32, i32
  }
}

</mosaic_0001>

<bundles_post_ra>
// kernel: tpu_custom_call.1
= control target key start
LH: loop header
LB: loop body
LE: loop exit
PB: predicated region body
PF: predicated region fallthrough
CT: control target
= control target key end

     0   :  { %8 = vsyncpa [#allocation4], 0  ;;  %s926_s0 = inlined_call_operand.vmem [shape: f32[2,256], index: 0, kind: input, shape index: {}]   ;;  %s927_s1 = inlined_call_operand.vmem [shape: f32[32,3], index: 1, kind: input, shape index: {}]   ;;  %s928_s2 = inlined_call_operand.hbm [shape: f32[2,32,256], index: 2, kind: input, shape index: {}]   ;;  %s929_s3 = inlined_call_operand.hbm [shape: f32[2,32,256], index: 3, kind: output, shape index: {}]  }
   0x1   :  { %10 = vsyncpa [#allocation4 + $0x1], 0 }
   0x2   :  { %11 = vsyncpa [#allocation5], 0 }
   0x3   :  { %13 = vsyncpa [#allocation5 + $0x1], 0  ;;  %s740_s12 = smov 0   ;;  %s742_s13 = smov 0  }
   0x4   :  { %s744_s14 = smov 0   ;;  %s746_s15 = smov 0  }
   0x5   :  { %s748_s16 = smov 0   ;;  %s750_s17 = smov 0  }
   0x6 LB: > { %s506_s18 = sadd.s32 4294967295, %s709_s17   ;;  %s507_s19 = sadd.s32 4294967294, %s709_s17   ;;  %s709_s17 = sphi %s750_s17, %s19_s17   ;;  %s705_s16 = sphi %s748_s16, %s940_s16   ;;  %s701_s15 = sphi %s746_s15, %s939_s15   ;;  %s697_s14 = sphi %s744_s14, %s938_s14   ;;  %s693_s13 = sphi %s742_s13, %s937_s13   ;;  %s689_s12 = sphi %s740_s12, %s936_s12  }
   0x7   : > { %s28_s20 = sadd.s32 1, %s705_s16  ;;  %s87_s21 = sadd.s32 1, %s697_s14 }
   0x8   : > { %p29_p0 = scmp.ge.s32.totalorder %s28_s20, 2  ;;  %p94_p1 = scmp.ne.s32.totalorder %s697_s14, %s693_s13 }
   0x9   : > { %p95_p2 = scmp.eq.s32.totalorder %s709_s17, 0  ;;  %p100_p3 = scmp.ne.s32.totalorder %s693_s13, %s689_s12 }
   0xa   : > { %s942_s20 = smov (%p29_p0, %s28_s20), 0  ;;  %p101_p5 = scmp.eq.s32.totalorder %s506_s18, 0 }
   0xb   : > { %p781_p4 = por %p95_p2, %p94_p1  ;;  %s82_s23 = ssub.s32 %s705_s16, %s942_s20 }
   0xc   : > { %p126_p6 = scmp.eq.s32.totalorder %s506_s18, 1  ;;  %p85_p7 = scmp.eq.s32.totalorder %s82_s23, 0 }
   0xd   : > { %p787_p8 = por %p101_p5, %p100_p3  ;;  %p132_p10 = scmp.eq.s32.totalorder %s507_s19, 1 }
   0xe   : > { %p791_p9 = por %p126_p6, %p94_p1  ;;  %p538_p13 = scmp.lt.s32.totalorder %s709_s17, 2 }
   0xf   : > { %s796_s26 = scalar_select %p85_p7, %s697_s14, %s87_s21  }
  0x10   : > { %p798_p11 = por %p132_p10, %p100_p3  ;;  %s164_s28 = sand.u32 1, %s697_s14  }
  0x11   : > { %s511_s29 = sshll.u32 %s164_s28, 6  ;;  %s524_s30 = sshll.u32 %s705_s16, 10 }
  0x12   : > { %s176_s6 = scalar_lea.hbm %s928_s2, %s524_s30  ;;  %s168_s7 = scalar_lea.vmem [#allocation3], %s511_s29 }
  0x13   : > { %s177_s8 = sshll.u32 %s168_s7, 4  ;;  %p811_p0 = pnand %p538_p13, %p781_p4  ;;  %s178_s8 = int_to_ptr.vmem [resolvable:$true] %s177_s8 }
  0x14   : > { %p514_p1 = scmp.ge.s32.totalorder %s709_s17, 1  ;;  %s165_s10 = scalar_lea.sflag [#allocation4], %s164_s28 }
  0x15   : > { %p603_p2 = pneg %p811_p0  ;;  %s614_s11 = scalar_lea.vmem %s178_s8, 1024 }
  0x16   : > { %p615_p3 = scmp.ne.s32.totalorder %s178_s8, %s614_s11  ;;  %s711_s18 = smov [#allocation3]  }
  0x17   : > { %s619_s19 = sshll.u32 %s711_s18, 4  ;;  %s620_s19 = int_to_ptr.vmem [resolvable:$false] %s619_s19 }
  0x18   : > { %p617_p5 = pnand %p615_p3, %p603_p2  ;;  %s621_s21 = scalar_lea.vmem %s620_s19, 2048 }
  0x19   : > { %p622_p7 = scmp.lt.s32.totalorder %s178_s8, %s620_s19  ;;  %p623_p10 = scmp.lt.s32.totalorder %s621_s21, %s614_s11 }
  0x1a   : > { %p618_p6 = pneg %p617_p5 }
  0x1b   : > { %p624_p12 = por %p623_p10, %p622_p7 }
  0x1d   : > { %p625_p4 = pnand %p624_p12, %p618_p6 }
  0x1f   : > { %628 = shalt.err (!%p625_p4)
}
  0x20   : > { %s712_s22 = smov 256   ;;  %s713_s23 = smov 16  }
  0x21   : > { %533 = dma.hbm_to_vmem [thread:$0]  (!%p811_p0), %s176_s6, 1024, %s178_s8, %s165_s10, %s712_s22, %s712_s22, %s713_s23  }
  0x22   : > { %p185_p13 = scmp.lt.s32.totalorder %s709_s17, 3 }
  0x24   : > { %p186_p2 = pnand %p514_p1, %p185_p13 }
  0x25   : > { %s824_s28 = sand.u32 (!%p186_p2), 1, %s693_s13  }
  0x26   : > { %189 = sbr.rel (%p186_p2) target bundleno = 234 (0xea), region = 32  ;;  %s515_s29 = sshll.u32 (!%p186_p2), %s824_s28, 6 }
  0x27   : > { %s192_s30 = scalar_lea.sflag (!%p186_p2), [#allocation4], %s824_s28  ;;  %s828_s4 = scalar_lea.vmem (!%p186_p2), [#allocation3], %s515_s29 }
  0x2b   : > { %680 = dma.done.wait (%p787_p8), %s192_s30, 1024  }
  0x2c   : > { %682 = vsyncadd (%p787_p8), %s192_s30, 4294966272  ;;  %s834_s5 = scalar_lea.vmem [#allocation6], %s515_s29  ;;  %p517_p12 = scmp.ne.s32.totalorder %s701_s15, 0 }
  0x2e   : > { %234 = sbr.rel (%p517_p12) target bundleno = 208 (0xd0), region = 40 }
  0x33   : > { %v237_v0 = vld [vmem:[%s927_s1 + $0x10] sm:$0xff]  ;;  %v235_v1 = vld [vmem:[%s927_s1] sm:$0xff]  ;;  %v714_v2 = vmov 0   ;;  %v238_v3 = vld [vmem:[%s927_s1 + $0x18] sm:$0xff]  ;;  %v715_v5 = vmov 2   ;;  %v716_v6 = vmov 1   ;;  %v261_v7 = vlaneseq }
  0x34   : > { %596 = vset.pattern.permute.xlu1 %v714_v2  ;;  %595 = vset.pattern.permute.xlu0 %v714_v2  ;;  %v236_v4 = vld [vmem:[%s927_s1 + $0x8] sm:$0xff]  ;;  %v239_v15 = vld [vmem:[%s926_s0] ss:$2 sm:$0x3] }
  0x35   : > { %252 = vperm.xlu1 %596, %v237_v0   ;;  %242 = vperm.xlu0 %595, %v235_v1   ;;  %v262_v10 = vshrl.u32 %v261_v7, 7  ;;  %v518_v20 = vld [vmem:[%s926_s0 + $0x1] ss:$2 sm:$0x3] }
  0x37   : > { %v263_v13 = vsub.s32 0, %v262_v10  ;;  %v267_v14 = vsub.s32 1, %v262_v10 }
  0x39   : > { %257 = vperm.xlu1 %596, %v238_v3   ;;  %247 = vperm.xlu0 %595, %v236_v4   ;;  %v264_v18 = vrot.slane %v239_v15, %v263_v13  ;;  %v268_v19 = vrot.slane %v239_v15, %v267_v14  ;;  %v325_v27 = vrot.slane %v518_v20, %v263_v13 }
  0x3a   : > { %v329_v28 = vrot.slane %v518_v20, %v267_v14 }
  0x3d   : > { %598 = vset.pattern.permute.xlu1 %v715_v5  ;;  %597 = vset.pattern.permute.xlu0 %v715_v5 }
  0x3e   : > { %284 = vperm.xlu1 %598, %v236_v4   ;;  %280 = vperm.xlu0 %597, %v235_v1  }
  0x42   : > { %288 = vperm.xlu1 %598, %v237_v0   ;;  %292 = vperm.xlu0 %597, %v238_v3  }
  0x46   : > { %599 = vset.pattern.permute.xlu1 %v716_v6  ;;  %600 = vset.pattern.permute.xlu0 %v716_v6 }
  0x47   : > { %306 = vperm.xlu1 %599, %v235_v1   ;;  %310 = vperm.xlu0 %600, %v236_v4  }
  0x4b   : > { %314 = vperm.xlu1 %599, %v237_v0  }
  0x4f   : > { %318 = vperm.xlu1 %599, %v238_v3  }
  0xb0   : > { %v253_v8 = vpop.permute.xlu1 %252  ;;  %v243_v9 = vpop.permute.xlu0 %242 }
  0xb1   : > { %v271_v23 = vmul.f32 %v264_v18, %v243_v9  ;;  %v272_v24 = vmul.f32 %v268_v19, %v243_v9  ;;  %v275_v39 = vmul.f32 %v264_v18, %v253_v8  ;;  %v276_v40 = vmul.f32 %v268_v19, %v253_v8 }
  0xb4   : > { %v258_v11 = vpop.permute.xlu1 %257  ;;  %v248_v12 = vpop.permute.xlu0 %247 }
  0xb5   : > { %v273_v25 = vmul.f32 %v264_v18, %v248_v12  ;;  %v274_v26 = vmul.f32 %v268_v19, %v248_v12  ;;  %v277_v50 = vmul.f32 %v264_v18, %v258_v11  ;;  %v278_v51 = vmul.f32 %v268_v19, %v258_v11 }
  0xb9   : > { %v285_v16 = vpop.permute.xlu1 %284  ;;  %v281_v17 = vpop.permute.xlu0 %280 }
  0xba   : > { %v297_v29 = vadd.f32 %v285_v16, %v273_v25  ;;  %v298_v30 = vadd.f32 %v285_v16, %v274_v26  ;;  %v295_v31 = vadd.f32 %v281_v17, %v271_v23  ;;  %v296_v32 = vadd.f32 %v281_v17, %v272_v24 }
  0xbd   : > { %v289_v21 = vpop.permute.xlu1 %288  ;;  %v293_v22 = vpop.permute.xlu0 %292 }
  0xbe   : > { %v299_v46 = vadd.f32 %v289_v21, %v275_v39  ;;  %v300_v47 = vadd.f32 %v289_v21, %v276_v40  ;;  %v301_v55 = vadd.f32 %v293_v22, %v277_v50  ;;  %v302_v56 = vadd.f32 %v293_v22, %v278_v51 }
  0xc2   : > { %v307_v33 = vpop.permute.xlu1 %306  ;;  %v311_v34 = vpop.permute.xlu0 %310 }
  0xc3   : > { %v332_v35 = vmul.f32 %v325_v27, %v307_v33  ;;  %v333_v36 = vmul.f32 %v329_v28, %v307_v33  ;;  %v334_v37 = vmul.f32 %v325_v27, %v311_v34  ;;  %v335_v38 = vmul.f32 %v329_v28, %v311_v34 }
  0xc5   : > { %v340_v41 = vadd.f32 %v332_v35, %v295_v31  ;;  %v341_v42 = vadd.f32 %v333_v36, %v296_v32  ;;  %v342_v43 = vadd.f32 %v334_v37, %v297_v29  ;;  %v343_v44 = vadd.f32 %v335_v38, %v298_v30 }
  0xc6   : > { %v315_v45 = vpop.permute.xlu1 %314 }
  0xc7   : > { %348 = vst [vmem:[#allocation2 + $0x30] sm:$0xff] %v340_v41  ;;  %349 = vst [vmem:[#allocation2] sm:$0xff] %v341_v42  ;;  %v336_v48 = vmul.f32 %v325_v27, %v315_v45  ;;  %v337_v49 = vmul.f32 %v329_v28, %v315_v45 }
  0xc8   : > { %350 = vst [vmem:[#allocation2 + $0x18] sm:$0xff] %v342_v43  ;;  %351 = vst [vmem:[#allocation2 + $0x10] sm:$0xff] %v343_v44 }
  0xc9   : > { %v344_v52 = vadd.f32 %v336_v48, %v299_v46  ;;  %v345_v53 = vadd.f32 %v337_v49, %v300_v47 }
  0xca   : > { %v319_v54 = vpop.permute.xlu1 %318 }
  0xcb   : > { %352 = vst [vmem:[#allocation2 + $0x8] sm:$0xff] %v344_v52  ;;  %353 = vst [vmem:[#allocation2 + $0x20] sm:$0xff] %v345_v53  ;;  %v338_v57 = vmul.f32 %v325_v27, %v319_v54  ;;  %v339_v58 = vmul.f32 %v329_v28, %v319_v54 }
  0xcd   : > { %v346_v59 = vadd.f32 %v338_v57, %v301_v55  ;;  %v347_v60 = vadd.f32 %v339_v58, %v302_v56 }
  0xcf   : > { %354 = vst [vmem:[#allocation2 + $0x28] sm:$0xff] %v346_v59  ;;  %355 = vst [vmem:[#allocation2 + $0x38] sm:$0xff] %v347_v60 }
  0xd0 PF: > { %v356_v61 = vld [vmem:[%s828_s4] sm:$0xff]  ;;  %v364_v62 = vld [vmem:[#allocation2 + $0x30] sm:$0xff]  ;;  %v357_v63 = vld [vmem:[%s828_s4 + $0x8] sm:$0xff]  ;;  %s525_s29 = sshll.u32 %s701_s15, 10  ;;  %s404_s30 = sshll.u32 %s834_s5, 4  ;;  %s874_s30 = int_to_ptr.vmem [resolvable:$true] %s404_s30 }
  0xd1   : > { %v372_v0 = vadd.f32 %v364_v62, %v356_v61  ;;  %v365_v1 = vld [vmem:[#allocation2] sm:$0xff]  ;;  %v358_v2 = vld [vmem:[%s828_s4 + $0x10] sm:$0xff]  ;;  %v366_v3 = vld [vmem:[#allocation2 + $0x18] sm:$0xff]  ;;  %s872_s7 = scalar_lea.hbm %s929_s3, %s525_s29  ;;  %s389_s8 = scalar_lea.sflag [#allocation5], %s824_s28 }
  0xd2   : > { %v373_v4 = vadd.f32 %v365_v1, %v357_v63  ;;  %v374_v5 = vadd.f32 %v366_v3, %v358_v2  ;;  %v359_v6 = vld [vmem:[%s828_s4 + $0x18] sm:$0xff]  ;;  %v367_v7 = vld [vmem:[#allocation2 + $0x10] sm:$0xff]  ;;  %v360_v8 = vld [vmem:[%s828_s4 + $0x20] sm:$0xff]  ;;  %s717_s9 = smov [#allocation6]  }
  0xd3   : > { %380 = vst [vmem:[%s834_s5] sm:$0xff] %v372_v0  ;;  %v375_v9 = vadd.f32 %v367_v7, %v359_v6  ;;  %v368_v10 = vld [vmem:[#allocation2 + $0x8] sm:$0xff]  ;;  %v369_v12 = vld [vmem:[#allocation2 + $0x20] sm:$0xff]  ;;  %v362_v15 = vld [vmem:[%s828_s4 + $0x30] sm:$0xff]  ;;  %s633_s24 = sshll.u32 %s717_s9, 4  ;;  %s634_s24 = int_to_ptr.vmem [resolvable:$false] %s633_s24 }
  0xd4   : > { %v361_v11 = vld [vmem:[%s828_s4 + $0x28] sm:$0xff]  ;;  %381 = vst [vmem:[%s834_s5 + $0x8] sm:$0xff] %v373_v4  ;;  %382 = vst [vmem:[%s834_s5 + $0x10] sm:$0xff] %v374_v5  ;;  %v376_v13 = vadd.f32 %v368_v10, %v360_v8  ;;  %v363_v17 = vld [vmem:[%s828_s4 + $0x38] sm:$0xff]  ;;  %s629_s4 = scalar_lea.vmem %s874_s30, 1024  ;;  %s635_s10 = scalar_lea.vmem %s634_s24, 2048 }
  0xd5   : > { %v377_v14 = vadd.f32 %v369_v12, %v361_v11  ;;  %383 = vst [vmem:[%s834_s5 + $0x18] sm:$0xff] %v375_v9  ;;  %p630_p8 = scmp.ne.s32.totalorder %s874_s30, %s629_s4  ;;  %p636_p3 = scmp.lt.s32.totalorder %s874_s30, %s634_s24 }
  0xd6   : > { %v370_v16 = vld [vmem:[#allocation2 + $0x28] sm:$0xff]  ;;  %v371_v19 = vld [vmem:[#allocation2 + $0x38] sm:$0xff]  ;;  %384 = vst [vmem:[%s834_s5 + $0x20] sm:$0xff] %v376_v13  ;;  %p637_p5 = scmp.lt.s32.totalorder %s635_s10, %s629_s4 }
  0xd7   : > { %v378_v18 = vadd.f32 %v370_v16, %v362_v15  ;;  %385 = vst [vmem:[%s834_s5 + $0x28] sm:$0xff] %v377_v14  ;;  %v379_v20 = vadd.f32 %v371_v19, %v363_v17  ;;  %p631_p0 = pnand %p630_p8, %p791_p9 }
  0xd8   : > { %p638_p6 = por %p637_p5, %p636_p3 }
  0xd9   : > { %386 = vst [vmem:[%s834_s5 + $0x30] sm:$0xff] %v378_v18  ;;  %387 = vst [vmem:[%s834_s5 + $0x38] sm:$0xff] %v379_v20  ;;  %p632_p1 = pneg %p631_p0 }
  0xdb   : > { %p639_p7 = pnand %p638_p6, %p632_p1 }
  0xdd   : > { %642 = shalt.err (!%p639_p7)
}
  0xde   : > { %s643_s5 = scalar_lea.hbm %s872_s7, 1024  ;;  %s647_s19 = scalar_lea.hbm %s929_s3, 2048 }
  0xdf   : > { %p644_p10 = scmp.ne.s32.totalorder %s872_s7, %s643_s5  ;;  %p648_p2 = scmp.lt.s32.totalorder %s872_s7, %s929_s3 }
  0xe0   : > { %p649_p12 = scmp.lt.s32.totalorder %s647_s19, %s643_s5 }
  0xe1   : > { %p645_p4 = pnand %p644_p10, %p791_p9 }
  0xe2   : > { %p650_p8 = por %p649_p12, %p648_p2 }
  0xe3   : > { %p646_p13 = pneg %p645_p4 }
  0xe5   : > { %p651_p0 = pnand %p650_p8, %p646_p13 }
  0xe7   : > { %654 = shalt.err (!%p651_p0)
}
  0xe8   : > { %s718_s23 = smov 256   ;;  %s719_s29 = smov 16  }
  0xe9   : > { %528 = dma.vmem_to_hbm [thread:$0]  (%p791_p9), %s874_s30, 1024, %s872_s7, %s389_s8, %s718_s23, %s718_s23, %s719_s29  }
  0xea PF: > { %s419_s15 = sand.u32 1, %s689_s12   ;;  %p935_p1 = scmp.ge.s32.totalorder %s709_s17, 2 }
  0xeb   : > { %s420_s6 = scalar_lea.sflag [#allocation5], %s419_s15 }
  0xec   : > { %p535_p3 = pnand %p935_p1, %p798_p11 }
  0xee   : > { %p536_p5 = pneg %p535_p3 }
  0xf0   : > { %684 = dma.done.wait (%p536_p5), %s420_s6, 1024  }
  0xf1   : > { %686 = vsyncadd (%p536_p5), %s420_s6, 4294966272  ;;  %s19_s17 = sadd.s32 1, %s709_s17   ;;  %s936_s12 = smov %s693_s13 }
  0xf2   : > { %p16_p6 = scmp.ge.s32.totalorder %s19_s17, 4   ;;  %s937_s13 = smov %s697_s14 }
  0xf3   : > { %s938_s14 = smov %s796_s26  ;;  %s939_s15 = smov %s705_s16 }
  0xf4   : > { %s940_s16 = smov %s942_s20  ;;  %18 = sbr.rel (!%p16_p6) target bundleno = 6 (0x6), region = 85 }
  0xf9   :  { %425 = vsyncpa [#allocation4], 1 }
  0xfa   :  { %427 = vsyncpa [#allocation4 + $0x1], 1 }
  0xfb   :  { %428 = vsyncpa [#allocation5], 1 }
  0xfc   :  { %430 = vsyncpa [#allocation5 + $0x1], 1 }

</bundles_post_ra>
